<compile_context>
chip_gen: v7x
topology: tpu7x:2x2x1
jax: 0.10.0
libtpu: 0.0.40
codegen_flags: <defaults>
</compile_context>

<pallas_src>
import functools

import jax
import jax.numpy as jnp
from jax.experimental import pallas as pl
from jax.experimental.pallas import tpu as pltpu


def _round_up(x, m):
    return ((x + m - 1) // m) * m


def _pick_vmem_limit():
    """Per-generation scoped-VMEM budget: ~75% of physical, clamped to [32, 100] MiB."""
    try:
        cap = int(pltpu.get_tpu_info().vmem_capacity_bytes)
    except Exception:
        return 48 * 1024 * 1024
    return max(32 * 1024 * 1024, min((cap * 3) // 4, 100 * 1024 * 1024))


# ----------------------------------------------------------------------------
# Pallas kernel: fused encoder MLP + reparameterization + rating head
# ----------------------------------------------------------------------------
def cevi_kernel(*refs, training: bool, word_num: int):
    if training:
        (uemb_ref, iemb_ref, w1u_ref, w1i_ref, b1_ref,
         wp_ref, bp_ref, wrs_ref, br_ref, eps_ref, out_ref) = refs
    else:
        (uemb_ref, iemb_ref, w1u_ref, w1i_ref, b1_ref,
         wp_ref, bp_ref, wrs_ref, br_ref, out_ref) = refs
        eps_ref = None

    W = word_num

    # encode_user_item[0]: Linear(2D -> H); torch.cat fused as a split-K sum.
    h = (jnp.dot(uemb_ref[...], w1u_ref[...], preferred_element_type=jnp.float32)
         + jnp.dot(iemb_ref[...], w1i_ref[...], preferred_element_type=jnp.float32)
         + b1_ref[...])                                       # (TB, H) f32
    h = jnp.maximum(h, 0.0).astype(jnp.bfloat16)              # ReLU -> bf16 for the MXU

    # encode_user_item[2]: Linear(H -> 2W), packed lane-dense to width OUT_W.
    # Columns [0,W) are the mean head, [W,2W) the logvar head, the rest are zero weights
    # (so lat == 0 exactly there).
    lat = jnp.dot(h, wp_ref[...], preferred_element_type=jnp.float32) + bp_ref[...]

    col = jax.lax.broadcasted_iota(jnp.int32, lat.shape, 1)
    is_mean = col < W
    # Per-column nonlinearity via lane select (tanh(0)*3 == 0 keeps the pad columns and
    # the rating column exactly zero).  For W < 128 this costs no extra EUP work vs. the
    # narrow formulation (EUP operates on whole vregs anyway).
    head = jnp.where(is_mean, jax.nn.sigmoid(lat), jnp.tanh(lat) * 3.0)
    # head: mean at cols [0,W), logvar at [W,2W), exact zeros elsewhere.

    # Rating head: rating = (mean + eps * exp(0.5*logvar)) . wr + br.
    # wrs replicates wr over BOTH column ranges; eps (training) is placed at the logvar
    # columns by the wrapper, so the whole thing is one lane reduction, no realignment.
    zc = jnp.where(is_mean, head, 0.0)                        # mean at [0,W), 0 elsewhere
    if training:
        zc = zc + jnp.exp(0.5 * head) * eps_ref[...]          # eps*std lands at [W,2W)
    rating = jnp.sum(zc * wrs_ref[...], axis=-1, keepdims=True) + br_ref[...]   # (TB, 1)

    # Single unmasked, lane-dense store: mean | logvar | rating | zero pad.
    out_ref[...] = head + jnp.where(col == 2 * W, rating, 0.0)


# ----------------------------------------------------------------------------
# Wrapper
# ----------------------------------------------------------------------------
def cevi_forward(user, item, params, *, training=False, eps=None, rng_key=None,
                 tile_b=1024):
    """Mirrors CEVI.forward(user, item). Returns (rating_scores, mean, logvar)."""
    # Embedding lookups (XLA gather glue).
    # TODO(synk): fuse the gather into the kernel via scalar-prefetched indices +
    # per-row manual DMA from HBM tables once ui_embedding_dim is large enough to
    # amortize per-row DMA overhead.
    user_emb = jnp.take(params["emb_user"], user, axis=0).astype(jnp.bfloat16)
    item_emb = jnp.take(params["emb_item"], item, axis=0).astype(jnp.bfloat16)

    B, D = user_emb.shape
    H = params["w1"].shape[1]
    W = params["wr"].shape[0]
    OUT_W = _round_up(2 * W + 1, 128)          # packed output / head width (lane-dense)

    # --- wrapper-side weight packing (all cheap XLA ops, done once per call) ---------
    w1u = params["w1"][:D, :].astype(jnp.bfloat16)            # (D, H)
    w1i = params["w1"][D:, :].astype(jnp.bfloat16)            # (D, H)
    b1 = params["b1"].astype(jnp.float32)                     # (1, H)

    # Fused head weights: cols [0,2W) hold w2/b2, the rest are zeros.
    wp = jnp.zeros((H, OUT_W), jnp.bfloat16).at[:, :2 * W].set(
        params["w2"].astype(jnp.bfloat16))                    # (H, OUT_W)
    bp = jnp.zeros((1, OUT_W), jnp.float32).at[:, :2 * W].set(
        params["b2"].astype(jnp.float32))                     # (1, OUT_W)

    # Rating weights replicated over the mean AND logvar column ranges (see kernel).
    wr_row = params["wr"].reshape(1, W).astype(jnp.float32)
    wrs = (jnp.zeros((1, OUT_W), jnp.float32)
           .at[:, :W].set(wr_row)
           .at[:, W:2 * W].set(wr_row))                       # (1, OUT_W)
    br = params["br"].reshape(1, 1).astype(jnp.float32)       # (1, 1)

    # --- batch tiling (multiples of 16: bf16 packs two rows per sublane) -------------
    TILE_B = max(16, min(_round_up(tile_b, 16), _round_up(B, 16)))
    B_pad = _round_up(B, TILE_B)
    if B_pad != B:
        pad = ((0, B_pad - B), (0, 0))
        user_emb = jnp.pad(user_emb, pad)
        item_emb = jnp.pad(item_emb, pad)
    grid = (B_pad // TILE_B,)

    def row_spec(shape):
        return pl.BlockSpec(shape, lambda i: (i, 0))

    def full_spec(shape):
        return pl.BlockSpec(shape, lambda i: (0, 0))          # VMEM-resident across grid

    operands = [user_emb, item_emb, w1u, w1i, b1, wp, bp, wrs, br]
    in_specs = [
        row_spec((TILE_B, D)), row_spec((TILE_B, D)),         # user_emb, item_emb
        full_spec((D, H)), full_spec((D, H)), full_spec((1, H)),   # w1u, w1i, b1
        full_spec((H, OUT_W)), full_spec((1, OUT_W)),              # wp, bp
        full_spec((1, OUT_W)), full_spec((1, 1)),                  # wrs, br
    ]

    if training:
        if eps is None:
            key = rng_key if rng_key is not None else jax.random.PRNGKey(0)
            eps = jax.random.normal(key, (B, W), jnp.float32)     # == torch.randn_like
        # Place eps at the logvar columns of a lane-dense slab; zeros elsewhere.
        eps_slab = jnp.zeros((B_pad, OUT_W), jnp.float32).at[:B, W:2 * W].set(
            eps.astype(jnp.float32))
        operands.append(eps_slab)
        in_specs.append(row_spec((TILE_B, OUT_W)))

    grid_spec = pltpu.PrefetchScalarGridSpec(
        num_scalar_prefetch=0,
        grid=grid,
        in_specs=in_specs,
        out_specs=row_spec((TILE_B, OUT_W)),
    )

    packed = pl.pallas_call(
        functools.partial(cevi_kernel, training=training, word_num=W),
        grid_spec=grid_spec,
        out_shape=jax.ShapeDtypeStruct((B_pad, OUT_W), jnp.float32),
        compiler_params=pltpu.CompilerParams(
            dimension_semantics=("parallel",),        # shard batch tiles over TCs (v7x)
            vmem_limit_bytes=_pick_vmem_limit(),      # ~96 MiB v5e/v6e, ~48 MiB v7x
        ),
    )(*operands)

    mean = packed[:B, :W]
    logvar = packed[:B, W:2 * W]
    rating = packed[:B, 2 * W:2 * W + 1]
    return rating, mean, logvar


# ----------------------------------------------------------------------------
# Deterministic parameter init (synthetic weights; shapes follow __init__)
# ----------------------------------------------------------------------------
def init_params(key, *, user_num, item_num, ui_embedding_dim, encode_tensor_n, word_num):
    ks = jax.random.split(key, 8)
    s = 0.1
    return {
        "emb_user": s * jax.random.normal(ks[0], (user_num, ui_embedding_dim), jnp.float32),
        "emb_item": s * jax.random.normal(ks[1], (item_num, ui_embedding_dim), jnp.float32),
        # encode_user_item[0]: Linear(2*D, encode_tensor_n)
        "w1": s * jax.random.normal(ks[2], (2 * ui_embedding_dim, encode_tensor_n), jnp.float32),
        "b1": s * jax.random.normal(ks[3], (1, encode_tensor_n), jnp.float32),
        # encode_user_item[2]: Linear(encode_tensor_n, word_num*2)
        "w2": s * jax.random.normal(ks[4], (encode_tensor_n, 2 * word_num), jnp.float32),
        "b2": s * jax.random.normal(ks[5], (1, 2 * word_num), jnp.float32),
        # rating: Linear(word_num, 1)
        "wr": s * jax.random.normal(ks[6], (word_num, 1), jnp.float32),
        "br": s * jax.random.normal(ks[7], (1, 1), jnp.float32),
    }


# Pure-JAX (f32) reference for verification.
def cevi_reference(user, item, params, *, training=False, eps=None):
    user_emb = jnp.take(params["emb_user"], user, axis=0)
    item_emb = jnp.take(params["emb_item"], item, axis=0)
    x = jnp.concatenate([user_emb, item_emb], axis=1)
    h = jnp.maximum(x @ params["w1"] + params["b1"], 0.0)
    latent = h @ params["w2"] + params["b2"]
    W = params["wr"].shape[0]
    mean = jax.nn.sigmoid(latent[:, :W])
    logvar = jnp.tanh(latent[:, W:]) * 3.0
    if training:
        z = mean + eps * jnp.exp(0.5 * logvar)
    else:
        z = mean
    rating = z @ params["wr"] + params["br"]
    return rating, mean, logvar


if __name__ == "__main__":
    # Small synthetic config (plays the role of `args`).
    user_num, item_num = 10, 12
    ui_embedding_dim, encode_tensor_n, word_num = 16, 32, 8
    batch = 8

    root = jax.random.PRNGKey(0)
    kp, ku, ki, ke = jax.random.split(root, 4)

    params = init_params(kp, user_num=user_num, item_num=item_num,
                         ui_embedding_dim=ui_embedding_dim,
                         encode_tensor_n=encode_tensor_n, word_num=word_num)

    user = jax.random.randint(ku, (batch,), 0, user_num, dtype=jnp.int32)
    item = jax.random.randint(ki, (batch,), 0, item_num, dtype=jnp.int32)

    # Eval-mode forward (self.training == False): z = mean.
    rating_e, mean_e, logvar_e = cevi_forward(user, item, params, training=False)
    jax.block_until_ready((rating_e, mean_e, logvar_e))

    # Training-mode forward: explicit eps so the path is fully verifiable.
    eps = jax.random.normal(ke, (batch, word_num), jnp.float32)
    rating_t, mean_t, logvar_t = cevi_forward(user, item, params, training=True, eps=eps)
    jax.block_until_ready((rating_t, mean_t, logvar_t))

    # Verify against the pure-f32 reference (bf16 matmuls -> loosened tolerance).
    ref_re, ref_me, ref_lve = cevi_reference(user, item, params, training=False)
    assert jnp.allclose(rating_e, ref_re, atol=3e-2, rtol=3e-2), "eval rating mismatch"
    assert jnp.allclose(mean_e, ref_me, atol=3e-2, rtol=3e-2), "eval mean mismatch"
    assert jnp.allclose(logvar_e, ref_lve, atol=3e-2, rtol=3e-2), "eval logvar mismatch"

    ref_rt, ref_mt, ref_lvt = cevi_reference(user, item, params, training=True, eps=eps)
    assert jnp.allclose(rating_t, ref_rt, atol=3e-2, rtol=3e-2), "train rating mismatch"
    assert jnp.allclose(mean_t, ref_mt, atol=3e-2, rtol=3e-2), "train mean mismatch"
    assert jnp.allclose(logvar_t, ref_lvt, atol=3e-2, rtol=3e-2), "train logvar mismatch"

    assert rating_e.shape == (batch, 1) and mean_e.shape == (batch, word_num) \
        and logvar_e.shape == (batch, word_num)
    assert bool(jnp.all(jnp.isfinite(rating_t))), "train rating not finite"

    print("KERNEL_OK")
</pallas_src>

<mosaic_0001>
module attributes {stable_mosaic.version = 11 : i64} {
  func.func @cevi_kernel(%arg0: i32, %arg1: memref<16x16xbf16, #tpu.memory_space<vmem>>, %arg2: memref<16x16xbf16, #tpu.memory_space<vmem>>, %arg3: memref<16x32xbf16, #tpu.memory_space<vmem>>, %arg4: memref<16x32xbf16, #tpu.memory_space<vmem>>, %arg5: memref<1x32xf32, #tpu.memory_space<vmem>>, %arg6: memref<32x128xbf16, #tpu.memory_space<vmem>>, %arg7: memref<1x128xf32, #tpu.memory_space<vmem>>, %arg8: memref<1x128xf32, #tpu.memory_space<vmem>>, %arg9: memref<1x1xf32, #tpu.memory_space<vmem>>, %arg10: memref<16x128xf32, #tpu.memory_space<vmem>>) attributes {dimension_semantics = [#tpu.dimension_semantics<parallel>], iteration_bounds = array<i64: 1>, scalar_prefetch = 0 : i64, scratch_operands = 0 : i64, tpu.core_type = #tpu.core_type<tc>, window_params = [{transform_indices = @transform_0, window_bounds = array<i64: 16, 16>}, {transform_indices = @transform_1, window_bounds = array<i64: 16, 16>}, {pipeline_mode = #tpu.pipeline_mode<synchronous>, transform_indices = @transform_2, window_bounds = array<i64: 16, 32>}, {pipeline_mode = #tpu.pipeline_mode<synchronous>, transform_indices = @transform_3, window_bounds = array<i64: 16, 32>}, {pipeline_mode = #tpu.pipeline_mode<synchronous>, transform_indices = @transform_4, window_bounds = array<i64: 1, 32>}, {pipeline_mode = #tpu.pipeline_mode<synchronous>, transform_indices = @transform_5, window_bounds = array<i64: 32, 128>}, {pipeline_mode = #tpu.pipeline_mode<synchronous>, transform_indices = @transform_6, window_bounds = array<i64: 1, 128>}, {pipeline_mode = #tpu.pipeline_mode<synchronous>, transform_indices = @transform_7, window_bounds = array<i64: 1, 128>}, {pipeline_mode = #tpu.pipeline_mode<synchronous>, transform_indices = @transform_8, window_bounds = array<i64: 1, 1>}, {transform_indices = @transform_9, window_bounds = array<i64: 16, 128>}]} {
    %c0 = arith.constant 0 : index
    %c0_0 = arith.constant 0 : index
    %0 = vector.load %arg1[%c0, %c0_0] : memref<16x16xbf16, #tpu.memory_space<vmem>>, vector<16x16xbf16>
    %c0_1 = arith.constant 0 : index
    %c0_2 = arith.constant 0 : index
    %1 = vector.load %arg3[%c0_1, %c0_2] : memref<16x32xbf16, #tpu.memory_space<vmem>>, vector<16x32xbf16>
    %cst = arith.constant dense<0.000000e+00> : vector<16x32xf32>
    %2 = tpu.matmul %0, %1, %cst {dimension_numbers = #tpu.dot_dimension_numbers<[1], [0], [0], [1], [0, 0, 1, 1], [], []>} : vector<16x16xbf16>, vector<16x32xbf16>, vector<16x32xf32> -> vector<16x32xf32>
    %c0_3 = arith.constant 0 : index
    %c0_4 = arith.constant 0 : index
    %3 = vector.load %arg2[%c0_3, %c0_4] : memref<16x16xbf16, #tpu.memory_space<vmem>>, vector<16x16xbf16>
    %c0_5 = arith.constant 0 : index
    %c0_6 = arith.constant 0 : index
    %4 = vector.load %arg4[%c0_5, %c0_6] : memref<16x32xbf16, #tpu.memory_space<vmem>>, vector<16x32xbf16>
    %cst_7 = arith.constant dense<0.000000e+00> : vector<16x32xf32>
    %5 = tpu.matmul %3, %4, %cst_7 {dimension_numbers = #tpu.dot_dimension_numbers<[1], [0], [0], [1], [0, 0, 1, 1], [], []>} : vector<16x16xbf16>, vector<16x32xbf16>, vector<16x32xf32> -> vector<16x32xf32>
    %6 = arith.addf %2, %5 : vector<16x32xf32>
    %c0_8 = arith.constant 0 : index
    %c0_9 = arith.constant 0 : index
    %7 = vector.load %arg5[%c0_8, %c0_9] : memref<1x32xf32, #tpu.memory_space<vmem>>, vector<1x32xf32>
    %8 = vector.broadcast %7 : vector<1x32xf32> to vector<16x32xf32>
    %9 = arith.addf %6, %8 : vector<16x32xf32>
    %cst_10 = arith.constant 0.000000e+00 : f32
    %10 = vector.broadcast %cst_10 : f32 to vector<16x32xf32>
    %11 = arith.maximumf %9, %10 : vector<16x32xf32>
    %12 = arith.truncf %11 : vector<16x32xf32> to vector<16x32xbf16>
    %c0_11 = arith.constant 0 : index
    %c0_12 = arith.constant 0 : index
    %13 = vector.load %arg6[%c0_11, %c0_12] : memref<32x128xbf16, #tpu.memory_space<vmem>>, vector<32x128xbf16>
    %cst_13 = arith.constant dense<0.000000e+00> : vector<16x128xf32>
    %14 = tpu.matmul %12, %13, %cst_13 {dimension_numbers = #tpu.dot_dimension_numbers<[1], [0], [0], [1], [0, 0, 1, 1], [], []>} : vector<16x32xbf16>, vector<32x128xbf16>, vector<16x128xf32> -> vector<16x128xf32>
    %c0_14 = arith.constant 0 : index
    %c0_15 = arith.constant 0 : index
    %15 = vector.load %arg7[%c0_14, %c0_15] : memref<1x128xf32, #tpu.memory_space<vmem>>, vector<1x128xf32>
    %16 = vector.broadcast %15 : vector<1x128xf32> to vector<16x128xf32>
    %17 = arith.addf %14, %16 : vector<16x128xf32>
    %18 = tpu.iota {dimensions = array<i32: 1>} : vector<16x128xi32>
    %c8_i32 = arith.constant 8 : i32
    %19 = vector.broadcast %c8_i32 : i32 to vector<16x128xi32>
    %20 = arith.cmpi slt, %18, %19 : vector<16x128xi32>
    %21 = arith.negf %17 : vector<16x128xf32>
    %22 = math.exp %21 : vector<16x128xf32>
    %cst_16 = arith.constant 1.000000e+00 : f32
    %23 = vector.broadcast %cst_16 : f32 to vector<16x128xf32>
    %24 = arith.addf %23, %22 : vector<16x128xf32>
    %25 = arith.divf %23, %24 : vector<16x128xf32>
    %26 = math.tanh %17 : vector<16x128xf32>
    %cst_17 = arith.constant 3.000000e+00 : f32
    %27 = vector.broadcast %cst_17 : f32 to vector<16x128xf32>
    %28 = arith.mulf %26, %27 : vector<16x128xf32>
    %29 = arith.select %20, %25, %28 : vector<16x128xi1>, vector<16x128xf32>
    %cst_18 = arith.constant 0.000000e+00 : f32
    %30 = vector.broadcast %cst_18 : f32 to vector<16x128xf32>
    %31 = arith.select %20, %29, %30 : vector<16x128xi1>, vector<16x128xf32>
    %c0_19 = arith.constant 0 : index
    %c0_20 = arith.constant 0 : index
    %32 = vector.load %arg8[%c0_19, %c0_20] : memref<1x128xf32, #tpu.memory_space<vmem>>, vector<1x128xf32>
    %33 = vector.broadcast %32 : vector<1x128xf32> to vector<16x128xf32>
    %34 = arith.mulf %31, %33 : vector<16x128xf32>
    %cst_21 = arith.constant dense<0.000000e+00> : vector<16xf32>
    %35 = vector.multi_reduction <add>, %34, %cst_21 [1] : vector<16x128xf32> to vector<16xf32>
    %36 = vector.shape_cast %35 : vector<16xf32> to vector<16x1xf32>
    %c0_22 = arith.constant 0 : index
    %c0_23 = arith.constant 0 : index
    %37 = vector.load %arg9[%c0_22, %c0_23] : memref<1x1xf32, #tpu.memory_space<vmem>>, vector<1x1xf32>
    %38 = vector.broadcast %37 : vector<1x1xf32> to vector<16x1xf32>
    %39 = arith.addf %36, %38 : vector<16x1xf32>
    %c16_i32 = arith.constant 16 : i32
    %40 = vector.broadcast %c16_i32 : i32 to vector<16x128xi32>
    %41 = arith.cmpi eq, %18, %40 : vector<16x128xi32>
    %cst_24 = arith.constant 0.000000e+00 : f32
    %42 = vector.shape_cast %39 : vector<16x1xf32> to vector<16x1xf32>
    %43 = vector.broadcast %42 : vector<16x1xf32> to vector<16x128xf32>
    %44 = vector.broadcast %cst_24 : f32 to vector<16x128xf32>
    %45 = arith.select %41, %43, %44 : vector<16x128xi1>, vector<16x128xf32>
    %46 = arith.addf %29, %45 : vector<16x128xf32>
    %c0_25 = arith.constant 0 : index
    %c0_26 = arith.constant 0 : index
    %47 = vector.load %arg10[%c0_25, %c0_26] : memref<16x128xf32, #tpu.memory_space<vmem>>, vector<16x128xf32>
    tpu.vector_store %arg10[%c0_25, %c0_26], %46 {strides = array<i32>} : memref<16x128xf32, #tpu.memory_space<vmem>>, vector<16x128xf32>,
    return
  }
  func.func @transform_0(%arg0: i32) -> (i32, i32) {
    %c0_i32 = arith.constant 0 : i32
    %c0_i32_0 = arith.constant 0 : i32
    return %arg0, %c0_i32 : i32, i32
  }
  func.func @transform_1(%arg0: i32) -> (i32, i32) {
    %c0_i32 = arith.constant 0 : i32
    %c0_i32_0 = arith.constant 0 : i32
    return %arg0, %c0_i32 : i32, i32
  }
  func.func @transform_2(%arg0: i32) -> (i32, i32) {
    %c0_i32 = arith.constant 0 : i32
    %c0_i32_0 = arith.constant 0 : i32
    %c0_i32_1 = arith.constant 0 : i32
    return %c0_i32, %c0_i32_0 : i32, i32
  }
  func.func @transform_3(%arg0: i32) -> (i32, i32) {
    %c0_i32 = arith.constant 0 : i32
    %c0_i32_0 = arith.constant 0 : i32
    %c0_i32_1 = arith.constant 0 : i32
    return %c0_i32, %c0_i32_0 : i32, i32
  }
  func.func @transform_4(%arg0: i32) -> (i32, i32) {
    %c0_i32 = arith.constant 0 : i32
    %c0_i32_0 = arith.constant 0 : i32
    %c0_i32_1 = arith.constant 0 : i32
    return %c0_i32, %c0_i32_0 : i32, i32
  }
  func.func @transform_5(%arg0: i32) -> (i32, i32) {
    %c0_i32 = arith.constant 0 : i32
    %c0_i32_0 = arith.constant 0 : i32
    %c0_i32_1 = arith.constant 0 : i32
    return %c0_i32, %c0_i32_0 : i32, i32
  }
  func.func @transform_6(%arg0: i32) -> (i32, i32) {
    %c0_i32 = arith.constant 0 : i32
    %c0_i32_0 = arith.constant 0 : i32
    %c0_i32_1 = arith.constant 0 : i32
    return %c0_i32, %c0_i32_0 : i32, i32
  }
  func.func @transform_7(%arg0: i32) -> (i32, i32) {
    %c0_i32 = arith.constant 0 : i32
    %c0_i32_0 = arith.constant 0 : i32
    %c0_i32_1 = arith.constant 0 : i32
    return %c0_i32, %c0_i32_0 : i32, i32
  }
  func.func @transform_8(%arg0: i32) -> (i32, i32) {
    %c0_i32 = arith.constant 0 : i32
    %c0_i32_0 = arith.constant 0 : i32
    %c0_i32_1 = arith.constant 0 : i32
    return %c0_i32, %c0_i32_0 : i32, i32
  }
  func.func @transform_9(%arg0: i32) -> (i32, i32) {
    %c0_i32 = arith.constant 0 : i32
    %c0_i32_0 = arith.constant 0 : i32
    return %arg0, %c0_i32 : i32, i32
  }
}

</mosaic_0001>

<bundles_post_ra>
// kernel: tpu_custom_call.1
= control target key start
LH: loop header
LB: loop body
LE: loop exit
PB: predicated region body
PF: predicated region fallthrough
CT: control target
= control target key end

     0   :  { %s729_s0 = inlined_call_operand.hbm [shape: bf16[16,16], index: 0, kind: input, shape index: {}]   ;;  %s730_s1 = inlined_call_operand.hbm [shape: bf16[16,16], index: 1, kind: input, shape index: {}]   ;;  %s731_s2 = inlined_call_operand.hbm [shape: bf16[16,32], index: 2, kind: input, shape index: {}]   ;;  %s732_s3 = inlined_call_operand.hbm [shape: bf16[16,32], index: 3, kind: input, shape index: {}]   ;;  %s733_s4 = inlined_call_operand.vmem [shape: f32[1,32], index: 4, kind: input, shape index: {}]   ;;  %s734_s5 = inlined_call_operand.vmem [shape: bf16[32,128], index: 5, kind: input, shape index: {}]   ;;  %s735_s6 = inlined_call_operand.vmem [shape: f32[1,128], index: 6, kind: input, shape index: {}]   ;;  %s736_s7 = inlined_call_operand.vmem [shape: f32[1,128], index: 7, kind: input, shape index: {}]   ;;  %s737_s8 = inlined_call_operand.<no memory space> [shape: f32[1,1], index: 8, kind: input, shape index: {}]   ;;  %s738_s9 = inlined_call_operand.hbm [shape: f32[16,128], index: 9, kind: output, shape index: {}]  }
   0x1   :  { %v14_v0 = vstv %s737_s8 }
   0x2   :  { %15 = vst [vmem:[#allocation2] sm:$0x1] %v14_v0 }
   0x3   :  { %16 = vsyncpa [#allocation4], 0 }
   0x4   :  { %17 = vsyncpa [#allocation7], 0 }
   0x5   :  { %18 = vsyncpa [#allocation10], 0 }
   0x6   :  { %19 = vsyncpa [#allocation5], 0  ;;  %s563_s11 = smov [#allocation6]   ;;  %s564_s13 = smov [#allocation3]  }
   0x7   :  { %s37_s12 = sshll.u32 %s563_s11, 4  ;;  %s25_s14 = sshll.u32 %s564_s13, 4  ;;  %s38_s12 = int_to_ptr.vmem [resolvable:$true] %s37_s12  ;;  %s628_s14 = int_to_ptr.vmem [resolvable:$true] %s25_s14 }
   0x8   :  { %s445_s17 = scalar_lea.hbm %s730_s1, 128 }
   0x9   :  { %p446_p0 = scmp.ne.s32.totalorder %s730_s1, %s445_s17  ;;  %p449_p1 = scmp.lt.u32.totalorder %s445_s17, %s730_s1 }
   0xb   :  { %p451_p2 = pnand %p449_p1, %p446_p0 }
   0xd   :  { %454 = shalt.err (!%p451_p2)
}
   0xe   :  { %s455_s21 = scalar_lea.vmem %s38_s12, 128  ;;  %p460_p4 = scmp.lt.s32.totalorder %s38_s12, %s38_s12 }
   0xf   :  { %p456_p3 = scmp.ne.s32.totalorder %s38_s12, %s455_s21  ;;  %p461_p5 = scmp.lt.s32.totalorder %s455_s21, %s455_s21 }
  0x11   :  { %p462_p6 = por %p461_p5, %p460_p4 }
  0x13   :  { %p463_p7 = pnand %p462_p6, %p456_p3 }
  0x15   :  { %466 = shalt.err (!%p463_p7)
}
  0x16   :  { %s565_s22 = smov 64   ;;  %s566_s23 = smov 4  }
  0x17   :  { %43 = dma.hbm_to_vmem [thread:$0]  %s730_s1, 128, %s38_s12, [#allocation7], %s565_s22, %s565_s22, %s566_s23  }
  0x18   :  { %s467_s28 = scalar_lea.hbm %s729_s0, 128 }
  0x19   :  { %p468_p8 = scmp.ne.s32.totalorder %s729_s0, %s467_s28  ;;  %p471_p9 = scmp.lt.u32.totalorder %s467_s28, %s729_s0 }
  0x1b   :  { %p473_p10 = pnand %p471_p9, %p468_p8 }
  0x1d   :  { %476 = shalt.err (!%p473_p10)
}
  0x1e   :  { %s477_s13 = scalar_lea.vmem %s628_s14, 128  ;;  %p482_p12 = scmp.lt.s32.totalorder %s628_s14, %s628_s14 }
  0x1f   :  { %p478_p11 = scmp.ne.s32.totalorder %s628_s14, %s477_s13  ;;  %p483_p13 = scmp.lt.s32.totalorder %s477_s13, %s477_s13 }
  0x21   :  { %p484_p0 = por %p483_p13, %p482_p12 }
  0x23   :  { %p485_p1 = pnand %p484_p0, %p478_p11 }
  0x25   :  { %488 = shalt.err (!%p485_p1)
}
  0x26   :  { %31 = dma.hbm_to_vmem [thread:$0]  %s729_s0, 128, %s628_s14, [#allocation4], %s565_s22, %s565_s22, %s566_s23  }
  0x27   :  { %s567_s15 = smov [#allocation8]   ;;  %s568_s17 = smov [#allocation9]  }
  0x28   :  { %s49_s16 = sshll.u32 %s567_s15, 4  ;;  %s61_s18 = sshll.u32 %s568_s17, 4  ;;  %s50_s16 = int_to_ptr.vmem [resolvable:$true] %s49_s16  ;;  %s665_s18 = int_to_ptr.vmem [resolvable:$true] %s61_s18 }
  0x29   :  { %s489_s20 = scalar_lea.hbm %s731_s2, 128 }
  0x2a   :  { %p490_p2 = scmp.ne.s32.totalorder %s731_s2, %s489_s20  ;;  %p493_p3 = scmp.lt.u32.totalorder %s489_s20, %s731_s2 }
  0x2c   :  { %p495_p4 = pnand %p493_p3, %p490_p2 }
  0x2e   :  { %498 = shalt.err (!%p495_p4)
}
  0x2f   :  { %s499_s0 = scalar_lea.vmem %s50_s16, 128  ;;  %p504_p6 = scmp.lt.s32.totalorder %s50_s16, %s50_s16 }
  0x30   :  { %p500_p5 = scmp.ne.s32.totalorder %s50_s16, %s499_s0  ;;  %p505_p7 = scmp.lt.s32.totalorder %s499_s0, %s499_s0 }
  0x32   :  { %p506_p8 = por %p505_p7, %p504_p6 }
  0x34   :  { %p507_p9 = pnand %p506_p8, %p500_p5 }
  0x36   :  { %510 = shalt.err (!%p507_p9)
}
  0x37   :  { %55 = dma.hbm_to_vmem [thread:$0]  %s731_s2, 128, %s50_s16, [#allocation7], %s565_s22, %s565_s22, %s566_s23  }
  0x38   :  { %s511_s30 = scalar_lea.hbm %s732_s3, 128 }
  0x39   :  { %p512_p10 = scmp.ne.s32.totalorder %s732_s3, %s511_s30  ;;  %p515_p11 = scmp.lt.u32.totalorder %s511_s30, %s732_s3 }
  0x3b   :  { %p517_p12 = pnand %p515_p11, %p512_p10 }
  0x3d   :  { %520 = shalt.err (!%p517_p12)
}
  0x3e   :  { %s521_s12 = scalar_lea.vmem %s665_s18, 128  ;;  %p526_p0 = scmp.lt.s32.totalorder %s665_s18, %s665_s18 }
  0x3f   :  { %p522_p13 = scmp.ne.s32.totalorder %s665_s18, %s521_s12  ;;  %p527_p1 = scmp.lt.s32.totalorder %s521_s12, %s521_s12 }
  0x41   :  { %p528_p2 = por %p527_p1, %p526_p0 }
  0x43   :  { %p529_p3 = pnand %p528_p2, %p522_p13 }
  0x45   :  { %532 = shalt.err (!%p529_p3)
}
  0x46   :  { %67 = dma.hbm_to_vmem [thread:$0]  %s732_s3, 128, %s665_s18, [#allocation10], %s565_s22, %s565_s22, %s566_s23  }
  0x47   :  { %555 = dma.done.wait [#allocation4], 128  }
  0x48   :  { %556 = vsyncadd [#allocation4], 4294967168 }
  0x49   :  { %557 = dma.done.wait [#allocation7], 256  }
  0x4a   :  { %558 = vsyncadd [#allocation7], 4294967040 }
  0x4b   :  { %559 = dma.done.wait [#allocation10], 128  }
  0x4c   :  { %560 = vsyncadd [#allocation10], 4294967168  ;;  %v569_v1 = vmov 0.0   ;;  %vm570_vm0 = vmmov 0   ;;  %v427_v2 = vld [vmem:[#allocation9] sm:$0xff]   ;;  %v428_v3 = vld [vmem:[#allocation8] sm:$0xff]   ;;  %v290_v37 = vlaneseq }
  0x4d   :  { %393 = vmatprep.subr.bf16.mxu0 %v569_v1  ;;  %399 = vmatprep.subr.bf16.mxu1 %v569_v1  ;;  %v429_v4 = vld [vmem:[#allocation6] sm:$0xff]   ;;  %vm110_vm1 = vcmask 130048   ;;  %v430_v5 = vld [vmem:[#allocation3] sm:$0xff]   ;;  %v377_v10 = vld [vmem:[%s733_s4] ss:$0 sm:$0xff]  ;;  %vm245_vm2 = vcmask 261120  }
  0x4e   :  { %395 = vmatprep.mubr.msk.bf16.mxu0 %vm570_vm0, %v569_v1  ;;  %401 = vmatprep.mubr.msk.bf16.mxu1 %vm570_vm0, %v569_v1  ;;  %v431_v6 = vld [vmem:[%s734_s5] sm:$0xff]   ;;  %v432_v7 = vld [vmem:[%s734_s5 + $0x8] sm:$0xff]   ;;  %v291_v38 = vand.u32 127, %v290_v37  ;;  %v571_v52 = vmov 0  }
  0x4f   :  { %394 = vmatpush3.bf16.msra.mxu0 %v427_v2  ;;  %400 = vmatpush3.bf16.msra.mxu1 %v428_v3  ;;  %v378_v24 = vld [vmem:[%s735_s6] ss:$0 sm:$0xff] }
  0x50   :  { %405 = vmatprep.subr.bf16.mxu0 %v569_v1  ;;  %vm292_vm3 = vcmp.lt.s32.totalorder %v291_v38, 8  ;;  %v384_v42 = vld [vmem:[%s736_s7] ss:$0 sm:$0xff]  ;;  %425 = vset.pattern.permute.xlu1 %v571_v52  ;;  %vm335_vm4 = vcmp.eq.s32.totalorder %v291_v38, 16  ;;  %s572_s7 = smov [#allocation11]  }
  0x51   :  { %426 = vset.pattern.permute.xlu0 %v571_v52  ;;  %v385_v53 = vld [vmem:[#allocation2] ss:$0 sm:$0xff]  ;;  %s357_s8 = sshll.u32 %s572_s7, 4  ;;  %s358_s8 = int_to_ptr.vmem [resolvable:$true] %s357_s8 }
  0x52   :  { %396 = vmatmul.mubr.msk.bf16.vlgmr.msra.gmra.mrb[0].mxu0 %vm110_vm1, %v429_v4  ;;  %402 = vmatmul.mubr.msk.bf16.vlgmr.msra.gmra.mrb[0].mxu1 %vm110_vm1, %v430_v5  ;;  %s533_s20 = scalar_lea.vmem %s358_s8, 256  ;;  %p538_p5 = scmp.lt.s32.totalorder %s358_s8, %s358_s8 }
  0x53   :  { %409 = vmatprep.mubr.msk.bf16.mxu0 %vm570_vm0, %v569_v1  ;;  %406 = vmatpush3.bf16.msra.mxu0 %v431_v6  ;;  %p534_p4 = scmp.ne.s32.totalorder %s358_s8, %s533_s20  ;;  %p539_p6 = scmp.lt.s32.totalorder %s533_s20, %s533_s20 }
  0x54   :  { %407 = vmatprep.subr.bf16.mxu0 %v569_v1 }
  0x55   :  { %p540_p7 = por %p539_p6, %p538_p5 }
  0x57   :  { %408 = vmatpush3.bf16.msra.mxu0 %v432_v7  ;;  %p541_p8 = pnand %p540_p7, %p534_p4 }
 0x125   :  { %v148_v8 = vpop.f32.mrb[0].mxu0  ;;  %v203_v9 = vpop.f32.mrb[0].mxu1 }
 0x126   :  { %v397_v11 = vpop.f32.mrb[1].mxu0  ;;  %v204_v12 = vadd.f32 %v203_v9, %v148_v8  ;;  %v403_v13 = vpop.f32.mrb[1].mxu1 }
 0x127   :  { %v151_v14 = vpop.f32.mrb[2].mxu0  ;;  %v206_v15 = vpop.f32.mrb[2].mxu1 }
 0x128   :  { %v398_v16 = vpop.f32.mrb[3].mxu0  ;;  %v217_v17 = vadd.f32 %v377_v10, %v204_v12  ;;  %v207_v18 = vadd.f32 %v206_v15, %v151_v14  ;;  %v404_v19 = vpop.f32.mrb[3].mxu1 }
 0x12a   :  { %v218_v20 = vadd.f32 %v377_v10, %v207_v18  ;;  %v219_v21 = vmax.f32 %v217_v17, 0.0 }
 0x12c   :  { %v220_v22 = vmax.f32 %v218_v20, 0.0 }
 0x12e   :  { %v221_v23 = vpack.c.bf16 %v220_v22, %v219_v21 }
 0x130   :  { %410 = vmatmul.mubr.msk.bf16.vlgmr.msra.gmra.mrb[4].mxu0 %vm245_vm2, %v221_v23 }
 0x203   :  { %v283_v25 = vpop.f32.mrb[4].mxu0 }
 0x204   :  { %v284_v26 = vadd.f32 %v378_v24, %v283_v25  ;;  %v411_v27 = vpop.f32.mrb[5].mxu0 }
 0x205   :  { %v286_v28 = vpop.f32.mrb[6].mxu0 }
 0x206   :  { %v382_v29 = vmul.f32 -1.442695, %v284_v26  ;;  %v287_v30 = vadd.f32 %v378_v24, %v286_v28  ;;  %v412_v31 = vpop.f32.mrb[7].mxu0 }
 0x208   :  { %433 = vpow2.f32 %v382_v29  ;;  %v383_v32 = vmul.f32 -1.442695, %v287_v30 }
 0x20a   :  { %435 = vpow2.f32 %v383_v32 }
 0x20b   :  { %437 = vtanh.f32 %v284_v26 }
 0x20c   :  { %439 = vtanh.f32 %v287_v30 }
 0x212   :  { %v434_v33 = vpop.eup %433 }
 0x213   :  { %v299_v34 = vadd.f32 1.0, %v434_v33 }
 0x214   :  { %v436_v35 = vpop.eup %435 }
 0x215   :  { %441 = vrcp.f32 %v299_v34  ;;  %v300_v36 = vadd.f32 1.0, %v436_v35  ;;  %v438_v39 = vpop.eup %437 }
 0x216   :  { %v440_v40 = vpop.eup %439  ;;  %v307_v41 = vmul.f32 3.0, %v438_v39 }
 0x217   :  { %443 = vrcp.f32 %v300_v36  ;;  %v308_v44 = vmul.f32 3.0, %v440_v40 }
 0x21f   :  { %v442_v43 = vpop.eup %441 }
 0x220   :  { %v311_v45 = vsel %vm292_vm3, %v442_v43, 0.0  ;;  %v309_v46 = vsel %vm292_vm3, %v442_v43, %v307_v41 }
 0x221   :  { %v444_v47 = vpop.eup %443  ;;  %v320_v48 = vmul.f32 %v384_v42, %v311_v45 }
 0x222   :  { %v312_v49 = vsel %vm292_vm3, %v444_v47, 0.0  ;;  %v310_v50 = vsel %vm292_vm3, %v444_v47, %v308_v44 }
 0x223   :  { %322 = vadd.xlane.f32.xlu0 %v320_v48  ;;  %v321_v51 = vmul.f32 %v384_v42, %v312_v49 }
 0x227   :  { %324 = vadd.xlane.f32.xlu0 %v321_v51 }
 0x2b0   :  { %v323_v54 = vpop.xlane.xlu0 %322 }
 0x2b1   :  { %v333_v55 = vadd.f32 %v385_v53, %v323_v54 }
 0x2b3   :  { %338 = vperm.xlu1 %425, %v333_v55  }
 0x2b4   :  { %v325_v56 = vpop.xlane.xlu0 %324 }
 0x2b5   :  { %v334_v57 = vadd.f32 %v385_v53, %v325_v56 }
 0x2b7   :  { %343 = vperm.xlu1 %425, %v334_v57  }
 0x332   :  { %v339_v58 = vpop.permute.xlu1 %338 }
 0x333   :  { %v346_v59 = vsel %vm335_vm4, %v339_v58, 0.0 }
 0x334   :  { %v348_v60 = vadd.f32 %v346_v59, %v309_v46 }
 0x336   :  { %350 = vst [vmem:[#allocation11] sm:$0xff] %v348_v60  ;;  %v344_v61 = vpop.permute.xlu1 %343 }
 0x337   :  { %v347_v62 = vsel %vm335_vm4, %v344_v61, 0.0 }
 0x338   :  { %v349_v63 = vadd.f32 %v347_v62, %v310_v50 }
 0x33a   :  { %351 = vst [vmem:[#allocation11 + $0x8] sm:$0xff] %v349_v63 }
 0x33b   :  { %544 = shalt.err (!%p541_p8)
}
 0x33c   :  { %s545_s25 = scalar_lea.hbm %s738_s9, 256 }
 0x33d   :  { %p546_p9 = scmp.ne.s32.totalorder %s738_s9, %s545_s25  ;;  %p549_p10 = scmp.lt.u32.totalorder %s545_s25, %s738_s9 }
 0x33f   :  { %p551_p11 = pnand %p549_p10, %p546_p9 }
 0x341   :  { %554 = shalt.err (!%p551_p11)
}
 0x342   :  { %s573_s28 = smov 128   ;;  %s574_s29 = smov 8  }
 0x343   :  { %363 = dma.vmem_to_hbm [thread:$0]  %s358_s8, 256, %s738_s9, [#allocation5], %s573_s28, %s573_s28, %s574_s29  }
 0x344   :  { %561 = dma.done.wait [#allocation5], 256  }
 0x345   :  { %562 = vsyncadd [#allocation5], 4294967040 }
 0x346   :  { %367 = vsyncpa [#allocation4], 1 }
 0x347   :  { %368 = vsyncpa [#allocation7], 1 }
 0x348   :  { %369 = vsyncpa [#allocation10], 1 }
 0x349   :  { %370 = vsyncpa [#allocation5], 1 }

</bundles_post_ra>
